<compile_context>
chip_gen: v6e
topology: v6e:2x2x1
jax: 0.10.0
libtpu: 0.0.40
codegen_flags: <defaults>
</compile_context>

<pallas_src>
import functools

import jax
import jax.numpy as jnp
from jax import lax
from jax.experimental import pallas as pl
from jax.experimental.pallas import tpu as pltpu

_NEG = -1e30  # finite "-inf": masked exps underflow to 0 without inf-inf NaNs


def _round_up(x, m):
    return (x + m - 1) // m * m


def _clip_loss_kernel(scale_ref, img_ref, txt_ref,
                      colm_ref, coll_ref, rsum_ref, dsum_ref,
                      m_r_ref, l_r_ref, dg_ref,
                      *, n_actual, tile_i, tile_j, masked, resident):
    i = pl.program_id(0)          # row tile (parallel)
    j = pl.program_id(1)          # column tile (arbitrary / innermost)
    nj = pl.num_programs(1)
    scale = scale_ref[0]

    # ---- reset per-row-tile running state at the first column tile ----
    @pl.when(j == 0)
    def _():
        m_r_ref[...] = jnp.full_like(m_r_ref, _NEG)
        l_r_ref[...] = jnp.zeros_like(l_r_ref)
        dg_ref[...] = jnp.zeros_like(dg_ref)

    img = img_ref[...]
    # (tile_i, tile_j) logits block: contract on the feature dim directly
    # (no explicit transpose), f32 MXU accumulation, per-tile scale multiply.
    logits = lax.dot_general(
        img, txt_ref[...],
        dimension_numbers=(((1,), (1,)), ((), ())),
        preferred_element_type=jnp.float32,
    ) * scale

    if masked:
        # Cheap padding mask: two 1-D validity vectors broadcast in one where.
        row_valid = (i * tile_i + lax.broadcasted_iota(
            jnp.int32, (tile_i, 1), 0)) < n_actual
        col_valid = (j * tile_j + lax.broadcasted_iota(
            jnp.int32, (1, tile_j), 1)) < n_actual
        logits = jnp.where(jnp.logical_and(row_valid, col_valid), logits, _NEG)

    # ---- single exp per block, shared between row and column statistics ----
    m_blk = jnp.max(logits, axis=1, keepdims=True)          # (tile_i, 1)
    p = jnp.exp(logits - m_blk)                             # exponents <= 0
    rs = jnp.sum(p, axis=1, keepdims=True)                  # (tile_i, 1)

    # online row logsumexp across column tiles (all rescale exponents <= 0)
    m_new = jnp.maximum(m_r_ref[...], m_blk)
    l_r_ref[...] = (l_r_ref[...] * jnp.exp(m_r_ref[...] - m_new)
                    + rs * jnp.exp(m_blk - m_new))
    m_r_ref[...] = m_new

    # per-(row-tile, column) partial stats relative to the block max K:
    #   sum_r exp(logits - K) = colsum(p * exp(m_blk - K)),  exp args <= 0.
    # Merged across row tiles by the JAX epilogue (logsumexp-combine).
    k_blk = jnp.max(m_blk, axis=0, keepdims=True)           # (1, 1)
    w = jnp.exp(m_blk - k_blk)                               # (tile_i, 1) <= 1
    cs = jnp.sum(p * w, axis=0, keepdims=True)               # (1, tile_j)
    colm_ref[...] = jnp.broadcast_to(k_blk, colm_ref.shape)
    coll_ref[...] = jnp.broadcast_to(cs, coll_ref.shape)

    # ---- diagonal term: row-wise feature dot against row-aligned text ----
    def _diag(txt_rows):
        dvec = jnp.sum(img.astype(jnp.float32) * txt_rows.astype(jnp.float32),
                       axis=1, keepdims=True) * scale         # (tile_i, 1)
        if masked:
            dvec = jnp.where(row_valid, dvec, 0.0)
        dg_ref[...] = jnp.sum(dvec, axis=0, keepdims=True)

    if resident:
        # text panel is fully resident: slice the rows aligned with this tile.
        @pl.when(j == nj - 1)
        def _():
            off = pl.multiple_of(i * tile_i, tile_i)
            _diag(txt_ref[pl.ds(off, tile_i), :])
    else:
        # square tiling: the diagonal block is the (i == j) column tile.
        @pl.when(j == i)
        def _():
            _diag(txt_ref[...])

    # ---- finalize this row tile on its last column tile ----
    @pl.when(j == nj - 1)
    def _():
        lse_r = m_r_ref[...] + jnp.log(l_r_ref[...])          # (tile_i, 1)
        if masked:
            lse_r = jnp.where(row_valid, lse_r, 0.0)
        rsum_ref[...] = jnp.broadcast_to(
            jnp.sum(lse_r, axis=0, keepdims=True), rsum_ref.shape)
        dsum_ref[...] = jnp.broadcast_to(dg_ref[...], dsum_ref.shape)


def _pick_tiles(n, d, itemsize):
    """Pick (tile_i, tile_j, n_pad, resident) under a conservative VMEM budget."""
    min_sub = {1: 32, 2: 16, 4: 8}[itemsize]
    budget = 24 * 1024 * 1024        # working-set target; fits v5e/v6e/v7x

    def need(ti, tj):
        return (2 * (ti + tj) * d * itemsize       # double-buffered input panels
                + 2 * (16 * tj + 2048) * 4         # double-buffered output blocks
                + 6 * ti * tj * 4                  # f32 (ti, tj) temporaries
                + (2 * ti + 8) * 4)                # scratch

    cap = max(_round_up(n, min_sub), min_sub)
    cands = [t for t in (1024, 512, 256, 128, 64, 32, 16, 8)
             if t % min_sub == 0 and t <= cap] or [min_sub]

    # Case A: text panel fully resident (fetched from HBM exactly once).
    for ti in cands:
        n_pad = _round_up(n, ti)
        if need(ti, n_pad) <= budget:
            return ti, n_pad, n_pad, True
    # Case B: square tiles, >= 128 so the stats lane blocks stay 128-aligned.
    for t in cands:
        if t < 128:
            break
        if need(t, t) <= budget:
            return t, t, _round_up(n, t), False
    return 128, 128, _round_up(n, 128), False


def clip_loss(image_features, text_features, logit_scale, *,
              block_rows=None, block_cols=None, cast_to_bf16=True):
    """ClipLoss.forward (world_size=1): image/text features (N, D), scalar scale."""
    n, d = image_features.shape
    assert text_features.shape == (n, d)

    # bf16 operands halve DMA bytes and run the MXU at native rate; the
    # accumulation and all softmax math stay in f32.
    if cast_to_bf16 and image_features.dtype == jnp.float32:
        image_features = image_features.astype(jnp.bfloat16)
        text_features = text_features.astype(jnp.bfloat16)
    itemsize = jnp.dtype(image_features.dtype).itemsize
    min_sub = {1: 32, 2: 16, 4: 8}[itemsize]

    if block_rows is None:
        tile_i, tile_j, n_pad, resident = _pick_tiles(n, d, itemsize)
    else:
        tile_i = _round_up(int(block_rows), min_sub)
        n_pad = _round_up(n, tile_i)
        if block_cols is None or int(block_cols) >= n_pad:
            tile_j, resident = n_pad, True
        else:
            tile_j = int(block_cols)
            assert (tile_j == tile_i and tile_j % 128 == 0
                    and n_pad % tile_j == 0), (
                "non-resident tiling requires square, 128-aligned tiles")
            resident = False

    ni = n_pad // tile_i
    nj = n_pad // tile_j
    masked = (n_pad != n)

    if masked:
        pad = n_pad - n
        image_features = jnp.pad(image_features, ((0, pad), (0, 0)))
        text_features = jnp.pad(text_features, ((0, pad), (0, 0)))

    scale = jnp.asarray(logit_scale, jnp.float32).reshape(1)

    kernel = functools.partial(
        _clip_loss_kernel, n_actual=n, tile_i=tile_i, tile_j=tile_j,
        masked=masked, resident=resident)

    vmem_need = (2 * (tile_i + tile_j) * d * itemsize
                 + 2 * (16 * tile_j + 2048) * 4
                 + 6 * tile_i * tile_j * 4
                 + (2 * tile_i + 8) * 4)
    vmem_limit = int(min(max(2 * vmem_need, 16 * 1024 * 1024),
                         48 * 1024 * 1024))

    bytes_in = (n_pad * d + (1 if resident else ni) * n_pad * d) * itemsize
    bytes_out = ni * (16 * n_pad + 2048) * 4
    cost = pl.CostEstimate(
        flops=2 * n_pad * n_pad * d + 2 * n_pad * d,
        transcendentals=n_pad * n_pad,
        bytes_accessed=bytes_in + bytes_out + 4)

    out_shapes = (
        jax.ShapeDtypeStruct((ni * 8, n_pad), jnp.float32),   # column part maxes
        jax.ShapeDtypeStruct((ni * 8, n_pad), jnp.float32),   # column part sums
        jax.ShapeDtypeStruct((ni * 8, 128), jnp.float32),     # sum of row lse / tile
        jax.ShapeDtypeStruct((ni * 8, 128), jnp.float32),     # sum of diag / tile
    )

    col_m, col_l, row_sum, diag_sum = pl.pallas_call(
        kernel,
        out_shape=out_shapes,
        grid_spec=pltpu.PrefetchScalarGridSpec(
            num_scalar_prefetch=1,                        # logit_scale in SMEM
            grid=(ni, nj),
            in_specs=[
                pl.BlockSpec((tile_i, d), lambda i, j, s: (i, 0)),   # image rows
                pl.BlockSpec((tile_j, d), lambda i, j, s: (j, 0)),   # text rows
            ],
            out_specs=[
                pl.BlockSpec((8, tile_j), lambda i, j, s: (i, j)),
                pl.BlockSpec((8, tile_j), lambda i, j, s: (i, j)),
                pl.BlockSpec((8, 128), lambda i, j, s: (i, 0)),
                pl.BlockSpec((8, 128), lambda i, j, s: (i, 0)),
            ],
            scratch_shapes=[
                pltpu.VMEM((tile_i, 1), jnp.float32),   # running row max
                pltpu.VMEM((tile_i, 1), jnp.float32),   # running row sum
                pltpu.VMEM((1, 1), jnp.float32),        # diag sum of this tile
            ]),
        compiler_params=pltpu.CompilerParams(
            dimension_semantics=("parallel", "arbitrary"),
            vmem_limit_bytes=vmem_limit),
        cost_estimate=cost,
    )(scale, image_features, text_features)

    # ---- tiny JAX epilogue: merge the per-row-tile partial statistics ----
    row_lse_sum = jnp.sum(row_sum.reshape(ni, 8, 128)[:, 0, 0])
    diag_total = jnp.sum(diag_sum.reshape(ni, 8, 128)[:, 0, 0])
    m_part = col_m.reshape(ni, 8, n_pad)[:, 0, :n]          # (ni, n)
    l_part = col_l.reshape(ni, 8, n_pad)[:, 0, :n]          # (ni, n)
    m_max = jnp.max(m_part, axis=0)
    s = jnp.sum(l_part * jnp.exp(m_part - m_max), axis=0)
    s = jnp.maximum(s, jnp.finfo(jnp.float32).tiny)
    col_lse_sum = jnp.sum(m_max + jnp.log(s))
    loss = (0.5 * (row_lse_sum + col_lse_sum) - diag_total) / n
    return loss


def clip_loss_ref(image_features, text_features, logit_scale):
    """Pure-JAX reference mirroring the PyTorch forward (world_size=1)."""
    img = image_features.astype(jnp.float32)
    txt = text_features.astype(jnp.float32)
    logits = logit_scale * jnp.dot(img, txt.T, precision=lax.Precision.HIGHEST)
    lse_i = jax.nn.logsumexp(logits, axis=1)     # cross-entropy(image->text)
    lse_t = jax.nn.logsumexp(logits, axis=0)     # cross-entropy(text->image)
    diag = jnp.diagonal(logits)
    return 0.5 * (jnp.mean(lse_i - diag) + jnp.mean(lse_t - diag))


if __name__ == "__main__":
    key = jax.random.PRNGKey(0)
    logit_scale = jnp.float32(1.0 / 0.07)

    def make(k, n, d):
        k1, k2 = jax.random.split(k)
        img = jax.random.normal(k1, (n, d), dtype=jnp.float32)
        txt = jax.random.normal(k2, (n, d), dtype=jnp.float32)
        # CLIP features are L2-normalized by the caller before the loss.
        img = img / jnp.linalg.norm(img, axis=-1, keepdims=True)
        txt = txt / jnp.linalg.norm(txt, axis=-1, keepdims=True)
        return img.astype(jnp.bfloat16), txt.astype(jnp.bfloat16)

    k1, k2, k3, k4 = jax.random.split(key, 4)
    cases = [
        ("resident 1x1 grid, padded", *make(k1, 8, 32), {}),
        ("resident 2x1 grid, padded", *make(k2, 200, 32), {}),
        ("tiled 3x3 grid, padded", *make(k3, 300, 64),
         dict(block_rows=128, block_cols=128)),
        ("tiled 2x2 grid, exact", *make(k4, 256, 64),
         dict(block_rows=128, block_cols=128)),
    ]
    for name, img, txt, kwargs in cases:
        out = jax.block_until_ready(clip_loss(img, txt, logit_scale, **kwargs))
        ref = jax.block_until_ready(clip_loss_ref(img, txt, logit_scale))
        assert jnp.isfinite(out), (name, out)
        assert jnp.allclose(out, ref, rtol=2e-3, atol=2e-3), (name, out, ref)

    print("KERNEL_OK")
</pallas_src>

<mosaic_0001>
module attributes {stable_mosaic.version = 11 : i64} {
  func.func @_clip_loss_kernel(%arg0: i32, %arg1: i32, %arg2: memref<1xf32, #tpu.memory_space<smem>>, %arg3: memref<16x32xbf16, #tpu.memory_space<vmem>>, %arg4: memref<16x32xbf16, #tpu.memory_space<vmem>>, %arg5: memref<8x16xf32, #tpu.memory_space<vmem>>, %arg6: memref<8x16xf32, #tpu.memory_space<vmem>>, %arg7: memref<8x128xf32, #tpu.memory_space<vmem>>, %arg8: memref<8x128xf32, #tpu.memory_space<vmem>>, %arg9: memref<16x1xf32, #tpu.memory_space<vmem>>, %arg10: memref<16x1xf32, #tpu.memory_space<vmem>>, %arg11: memref<1x1xf32, #tpu.memory_space<vmem>>) attributes {dimension_semantics = [#tpu.dimension_semantics<parallel>, #tpu.dimension_semantics<arbitrary>], iteration_bounds = array<i64: 1, 1>, scalar_prefetch = 1 : i64, scratch_operands = 3 : i64, tpu.core_type = #tpu.core_type<tc>, window_params = [{transform_indices = @transform_0, window_bounds = array<i64: 16, 32>}, {transform_indices = @transform_1, window_bounds = array<i64: 16, 32>}, {transform_indices = @transform_2, window_bounds = array<i64: 8, 16>}, {transform_indices = @transform_3, window_bounds = array<i64: 8, 16>}, {transform_indices = @transform_4, window_bounds = array<i64: 8, 128>}, {transform_indices = @transform_5, window_bounds = array<i64: 8, 128>}]} {
    %c0 = arith.constant 0 : index
    %0 = memref.load %arg2[%c0] : memref<1xf32, #tpu.memory_space<smem>>
    %c0_i32 = arith.constant 0 : i32
    %1 = arith.cmpi eq, %arg1, %c0_i32 : i32
    %2 = arith.extui %1 : i1 to i32
    %c0_i32_0 = arith.constant 0 : i32
    %3 = arith.cmpi ne, %2, %c0_i32_0 : i32
    scf.if %3 {
      %cst_30 = arith.constant -1.000000e+30 : f32
      %67 = vector.broadcast %cst_30 : f32 to vector<16x1xf32>
      %c0_31 = arith.constant 0 : index
      %c0_32 = arith.constant 0 : index
      %68 = vector.load %arg9[%c0_31, %c0_32] : memref<16x1xf32, #tpu.memory_space<vmem>>, vector<16x1xf32>
      tpu.vector_store %arg9[%c0_31, %c0_32], %67 {strides = array<i32>} : memref<16x1xf32, #tpu.memory_space<vmem>>, vector<16x1xf32>,
      %cst_33 = arith.constant 0.000000e+00 : f32
      %69 = vector.broadcast %cst_33 : f32 to vector<16x1xf32>
      %c0_34 = arith.constant 0 : index
      %c0_35 = arith.constant 0 : index
      %70 = vector.load %arg10[%c0_34, %c0_35] : memref<16x1xf32, #tpu.memory_space<vmem>>, vector<16x1xf32>
      tpu.vector_store %arg10[%c0_34, %c0_35], %69 {strides = array<i32>} : memref<16x1xf32, #tpu.memory_space<vmem>>, vector<16x1xf32>,
      %cst_36 = arith.constant 0.000000e+00 : f32
      %71 = vector.broadcast %cst_36 : f32 to vector<1x1xf32>
      %c0_37 = arith.constant 0 : index
      %c0_38 = arith.constant 0 : index
      %72 = vector.load %arg11[%c0_37, %c0_38] : memref<1x1xf32, #tpu.memory_space<vmem>>, vector<1x1xf32>
      tpu.vector_store %arg11[%c0_37, %c0_38], %71 {strides = array<i32>} : memref<1x1xf32, #tpu.memory_space<vmem>>, vector<1x1xf32>,
    } else {
    }
    %c0_1 = arith.constant 0 : index
    %c0_2 = arith.constant 0 : index
    %4 = vector.load %arg3[%c0_1, %c0_2] : memref<16x32xbf16, #tpu.memory_space<vmem>>, vector<16x32xbf16>
    %c0_3 = arith.constant 0 : index
    %c0_4 = arith.constant 0 : index
    %5 = vector.load %arg4[%c0_3, %c0_4] : memref<16x32xbf16, #tpu.memory_space<vmem>>, vector<16x32xbf16>
    %cst = arith.constant dense<0.000000e+00> : vector<16x16xf32>
    %6 = tpu.matmul %4, %5, %cst {dimension_numbers = #tpu.dot_dimension_numbers<[1], [1], [0], [0], [0, 0, 1, 0], [], []>} : vector<16x32xbf16>, vector<16x32xbf16>, vector<16x16xf32> -> vector<16x16xf32>
    %7 = vector.broadcast %0 : f32 to vector<16x16xf32>
    %8 = arith.mulf %6, %7 : vector<16x16xf32>
    %c16_i32 = arith.constant 16 : i32
    %9 = arith.muli %arg0, %c16_i32 : i32
    %10 = tpu.iota {dimensions = array<i32: 0>} : vector<16x1xi32>
    %11 = vector.broadcast %9 : i32 to vector<16x1xi32>
    %12 = arith.addi %11, %10 : vector<16x1xi32>
    %c8_i32 = arith.constant 8 : i32
    %13 = vector.broadcast %c8_i32 : i32 to vector<16x1xi32>
    %14 = arith.cmpi slt, %12, %13 : vector<16x1xi32>
    %c16_i32_5 = arith.constant 16 : i32
    %15 = arith.muli %arg1, %c16_i32_5 : i32
    %16 = tpu.iota {dimensions = array<i32: 1>} : vector<1x16xi32>
    %17 = vector.broadcast %15 : i32 to vector<1x16xi32>
    %18 = arith.addi %17, %16 : vector<1x16xi32>
    %c8_i32_6 = arith.constant 8 : i32
    %19 = vector.broadcast %c8_i32_6 : i32 to vector<1x16xi32>
    %20 = arith.cmpi slt, %18, %19 : vector<1x16xi32>
    %21 = vector.broadcast %14 : vector<16x1xi1> to vector<16x16xi1>
    %22 = vector.broadcast %20 : vector<1x16xi1> to vector<16x16xi1>
    %23 = arith.andi %21, %22 : vector<16x16xi1>
    %cst_7 = arith.constant -1.000000e+30 : f32
    %24 = vector.broadcast %cst_7 : f32 to vector<16x16xf32>
    %25 = arith.select %23, %8, %24 : vector<16x16xi1>, vector<16x16xf32>
    %cst_8 = arith.constant dense<0xFF800000> : vector<16xf32>
    %26 = vector.multi_reduction <maximumf>, %25, %cst_8 [1] : vector<16x16xf32> to vector<16xf32>
    %27 = vector.shape_cast %26 : vector<16xf32> to vector<16x1xf32>
    %28 = vector.broadcast %27 : vector<16x1xf32> to vector<16x16xf32>
    %29 = arith.subf %25, %28 : vector<16x16xf32>
    %30 = math.exp %29 : vector<16x16xf32>
    %cst_9 = arith.constant dense<0.000000e+00> : vector<16xf32>
    %31 = vector.multi_reduction <add>, %30, %cst_9 [1] : vector<16x16xf32> to vector<16xf32>
    %32 = vector.shape_cast %31 : vector<16xf32> to vector<16x1xf32>
    %c0_10 = arith.constant 0 : index
    %c0_11 = arith.constant 0 : index
    %33 = vector.load %arg9[%c0_10, %c0_11] : memref<16x1xf32, #tpu.memory_space<vmem>>, vector<16x1xf32>
    %34 = arith.maximumf %33, %27 : vector<16x1xf32>
    %c0_12 = arith.constant 0 : index
    %c0_13 = arith.constant 0 : index
    %35 = vector.load %arg10[%c0_12, %c0_13] : memref<16x1xf32, #tpu.memory_space<vmem>>, vector<16x1xf32>
    %c0_14 = arith.constant 0 : index
    %c0_15 = arith.constant 0 : index
    %36 = vector.load %arg9[%c0_14, %c0_15] : memref<16x1xf32, #tpu.memory_space<vmem>>, vector<16x1xf32>
    %37 = arith.subf %36, %34 : vector<16x1xf32>
    %38 = math.exp %37 : vector<16x1xf32>
    %39 = arith.mulf %35, %38 : vector<16x1xf32>
    %40 = arith.subf %27, %34 : vector<16x1xf32>
    %41 = math.exp %40 : vector<16x1xf32>
    %42 = arith.mulf %32, %41 : vector<16x1xf32>
    %43 = arith.addf %39, %42 : vector<16x1xf32>
    %c0_16 = arith.constant 0 : index
    %c0_17 = arith.constant 0 : index
    %44 = vector.load %arg10[%c0_16, %c0_17] : memref<16x1xf32, #tpu.memory_space<vmem>>, vector<16x1xf32>
    tpu.vector_store %arg10[%c0_16, %c0_17], %43 {strides = array<i32>} : memref<16x1xf32, #tpu.memory_space<vmem>>, vector<16x1xf32>,
    %c0_18 = arith.constant 0 : index
    %c0_19 = arith.constant 0 : index
    %45 = vector.load %arg9[%c0_18, %c0_19] : memref<16x1xf32, #tpu.memory_space<vmem>>, vector<16x1xf32>
    tpu.vector_store %arg9[%c0_18, %c0_19], %34 {strides = array<i32>} : memref<16x1xf32, #tpu.memory_space<vmem>>, vector<16x1xf32>,
    %cst_20 = arith.constant dense<0xFF800000> : vector<1xf32>
    %46 = vector.multi_reduction <maximumf>, %27, %cst_20 [0] : vector<16x1xf32> to vector<1xf32>
    %47 = vector.shape_cast %46 : vector<1xf32> to vector<1x1xf32>
    %48 = vector.broadcast %47 : vector<1x1xf32> to vector<16x1xf32>
    %49 = arith.subf %27, %48 : vector<16x1xf32>
    %50 = math.exp %49 : vector<16x1xf32>
    %51 = vector.broadcast %50 : vector<16x1xf32> to vector<16x16xf32>
    %52 = arith.mulf %30, %51 : vector<16x16xf32>
    %cst_21 = arith.constant dense<0.000000e+00> : vector<16xf32>
    %53 = vector.multi_reduction <add>, %52, %cst_21 [0] : vector<16x16xf32> to vector<16xf32>
    %54 = vector.shape_cast %53 : vector<16xf32> to vector<1x16xf32>
    %55 = vector.shape_cast %47 : vector<1x1xf32> to vector<1x1xf32>
    %56 = vector.broadcast %55 : vector<1x1xf32> to vector<8x16xf32>
    %c0_22 = arith.constant 0 : index
    %c0_23 = arith.constant 0 : index
    %57 = vector.load %arg5[%c0_22, %c0_23] : memref<8x16xf32, #tpu.memory_space<vmem>>, vector<8x16xf32>
    tpu.vector_store %arg5[%c0_22, %c0_23], %56 {strides = array<i32>} : memref<8x16xf32, #tpu.memory_space<vmem>>, vector<8x16xf32>,
    %58 = vector.shape_cast %54 : vector<1x16xf32> to vector<1x16xf32>
    %59 = vector.broadcast %58 : vector<1x16xf32> to vector<8x16xf32>
    %c0_24 = arith.constant 0 : index
    %c0_25 = arith.constant 0 : index
    %60 = vector.load %arg6[%c0_24, %c0_25] : memref<8x16xf32, #tpu.memory_space<vmem>>, vector<8x16xf32>
    tpu.vector_store %arg6[%c0_24, %c0_25], %59 {strides = array<i32>} : memref<8x16xf32, #tpu.memory_space<vmem>>, vector<8x16xf32>,
    %c0_i32_26 = arith.constant 0 : i32
    %61 = arith.cmpi eq, %arg1, %c0_i32_26 : i32
    %62 = arith.extui %61 : i1 to i32
    %c0_i32_27 = arith.constant 0 : i32
    %63 = arith.cmpi ne, %62, %c0_i32_27 : i32
    scf.if %63 {
      %c16_i32_30 = arith.constant 16 : i32
      %67 = arith.muli %arg0, %c16_i32_30 : i32
      %68 = tpu.assume_multiple %67, 16 : i32
      %69 = arith.index_cast %68 : i32 to index
      %c0_31 = arith.constant 0 : index
      %70 = vector.load %arg4[%69, %c0_31] : memref<16x32xbf16, #tpu.memory_space<vmem>>, vector<16x32xbf16>
      %71 = arith.extf %4 : vector<16x32xbf16> to vector<16x32xf32>
      %72 = arith.extf %70 : vector<16x32xbf16> to vector<16x32xf32>
      %73 = arith.mulf %71, %72 : vector<16x32xf32>
      %cst_32 = arith.constant dense<0.000000e+00> : vector<16xf32>
      %74 = vector.multi_reduction <add>, %73, %cst_32 [1] : vector<16x32xf32> to vector<16xf32>
      %75 = vector.shape_cast %74 : vector<16xf32> to vector<16x1xf32>
      %76 = vector.broadcast %0 : f32 to vector<16x1xf32>
      %77 = arith.mulf %75, %76 : vector<16x1xf32>
      %cst_33 = arith.constant 0.000000e+00 : f32
      %78 = vector.broadcast %cst_33 : f32 to vector<16x1xf32>
      %79 = arith.select %14, %77, %78 : vector<16x1xi1>, vector<16x1xf32>
      %cst_34 = arith.constant dense<0.000000e+00> : vector<1xf32>
      %80 = vector.multi_reduction <add>, %79, %cst_34 [0] : vector<16x1xf32> to vector<1xf32>
      %81 = vector.shape_cast %80 : vector<1xf32> to vector<1x1xf32>
      %c0_35 = arith.constant 0 : index
      %c0_36 = arith.constant 0 : index
      %82 = vector.load %arg11[%c0_35, %c0_36] : memref<1x1xf32, #tpu.memory_space<vmem>>, vector<1x1xf32>
      tpu.vector_store %arg11[%c0_35, %c0_36], %81 {strides = array<i32>} : memref<1x1xf32, #tpu.memory_space<vmem>>, vector<1x1xf32>,
    } else {
    }
    %c0_i32_28 = arith.constant 0 : i32
    %64 = arith.cmpi eq, %arg1, %c0_i32_28 : i32
    %65 = arith.extui %64 : i1 to i32
    %c0_i32_29 = arith.constant 0 : i32
    %66 = arith.cmpi ne, %65, %c0_i32_29 : i32
    scf.if %66 {
      %c0_30 = arith.constant 0 : index
      %c0_31 = arith.constant 0 : index
      %67 = vector.load %arg9[%c0_30, %c0_31] : memref<16x1xf32, #tpu.memory_space<vmem>>, vector<16x1xf32>
      %c0_32 = arith.constant 0 : index
      %c0_33 = arith.constant 0 : index
      %68 = vector.load %arg10[%c0_32, %c0_33] : memref<16x1xf32, #tpu.memory_space<vmem>>, vector<16x1xf32>
      %69 = math.log %68 : vector<16x1xf32>
      %70 = arith.addf %67, %69 : vector<16x1xf32>
      %cst_34 = arith.constant 0.000000e+00 : f32
      %71 = vector.broadcast %cst_34 : f32 to vector<16x1xf32>
      %72 = arith.select %14, %70, %71 : vector<16x1xi1>, vector<16x1xf32>
      %cst_35 = arith.constant dense<0.000000e+00> : vector<1xf32>
      %73 = vector.multi_reduction <add>, %72, %cst_35 [0] : vector<16x1xf32> to vector<1xf32>
      %74 = vector.shape_cast %73 : vector<1xf32> to vector<1x1xf32>
      %75 = vector.shape_cast %74 : vector<1x1xf32> to vector<1x1xf32>
      %76 = vector.broadcast %75 : vector<1x1xf32> to vector<8x128xf32>
      %c0_36 = arith.constant 0 : index
      %c0_37 = arith.constant 0 : index
      %77 = vector.load %arg7[%c0_36, %c0_37] : memref<8x128xf32, #tpu.memory_space<vmem>>, vector<8x128xf32>
      tpu.vector_store %arg7[%c0_36, %c0_37], %76 {strides = array<i32>} : memref<8x128xf32, #tpu.memory_space<vmem>>, vector<8x128xf32>,
      %c0_38 = arith.constant 0 : index
      %c0_39 = arith.constant 0 : index
      %78 = vector.load %arg11[%c0_38, %c0_39] : memref<1x1xf32, #tpu.memory_space<vmem>>, vector<1x1xf32>
      %79 = vector.shape_cast %78 : vector<1x1xf32> to vector<1x1xf32>
      %80 = vector.broadcast %79 : vector<1x1xf32> to vector<8x128xf32>
      %c0_40 = arith.constant 0 : index
      %c0_41 = arith.constant 0 : index
      %81 = vector.load %arg8[%c0_40, %c0_41] : memref<8x128xf32, #tpu.memory_space<vmem>>, vector<8x128xf32>
      tpu.vector_store %arg8[%c0_40, %c0_41], %80 {strides = array<i32>} : memref<8x128xf32, #tpu.memory_space<vmem>>, vector<8x128xf32>,
    } else {
    }
    return
  }
  func.func @transform_0(%arg0: i32, %arg1: i32, %arg2: memref<1xf32, #tpu.memory_space<smem>>) -> (i32, i32) {
    %c0_i32 = arith.constant 0 : i32
    %c0_i32_0 = arith.constant 0 : i32
    return %arg0, %c0_i32 : i32, i32
  }
  func.func @transform_1(%arg0: i32, %arg1: i32, %arg2: memref<1xf32, #tpu.memory_space<smem>>) -> (i32, i32) {
    %c0_i32 = arith.constant 0 : i32
    %c0_i32_0 = arith.constant 0 : i32
    return %arg1, %c0_i32 : i32, i32
  }
  func.func @transform_2(%arg0: i32, %arg1: i32, %arg2: memref<1xf32, #tpu.memory_space<smem>>) -> (i32, i32) {
    %c0_i32 = arith.constant 0 : i32
    return %arg0, %arg1 : i32, i32
  }
  func.func @transform_3(%arg0: i32, %arg1: i32, %arg2: memref<1xf32, #tpu.memory_space<smem>>) -> (i32, i32) {
    %c0_i32 = arith.constant 0 : i32
    return %arg0, %arg1 : i32, i32
  }
  func.func @transform_4(%arg0: i32, %arg1: i32, %arg2: memref<1xf32, #tpu.memory_space<smem>>) -> (i32, i32) {
    %c0_i32 = arith.constant 0 : i32
    %c0_i32_0 = arith.constant 0 : i32
    return %arg0, %c0_i32 : i32, i32
  }
  func.func @transform_5(%arg0: i32, %arg1: i32, %arg2: memref<1xf32, #tpu.memory_space<smem>>) -> (i32, i32) {
    %c0_i32 = arith.constant 0 : i32
    %c0_i32_0 = arith.constant 0 : i32
    return %arg0, %c0_i32 : i32, i32
  }
}

</mosaic_0001>

<bundles_post_ra>
// kernel: tpu_custom_call.1
= control target key start
LH: loop header
LB: loop body
LE: loop exit
PB: predicated region body
PF: predicated region fallthrough
CT: control target
= control target key end

     0   :  { %13 = vsyncpa [#allocation8], 0  ;;  %s648_s0 = inlined_call_operand.<no memory space> [shape: f32[1], index: 0, kind: input, shape index: {}]   ;;  %s649_s1 = inlined_call_operand.hbm [shape: bf16[16,32], index: 1, kind: input, shape index: {}]   ;;  %s650_s2 = inlined_call_operand.hbm [shape: bf16[16,32], index: 2, kind: input, shape index: {}]   ;;  %s651_s3 = inlined_call_operand.hbm [shape: f32[8,16], index: 3, kind: output, shape index: {0}]   ;;  %s652_s4 = inlined_call_operand.hbm [shape: f32[8,16], index: 4, kind: output, shape index: {1}]   ;;  %s653_s5 = inlined_call_operand.hbm [shape: f32[8,128], index: 5, kind: output, shape index: {2}]   ;;  %s654_s6 = inlined_call_operand.hbm [shape: f32[8,128], index: 6, kind: output, shape index: {3}]  }
   0x1   :  { %14 = vsyncpa [#allocation11], 0 }
   0x2   :  { %15 = vsyncpa [#allocation9], 0 }
   0x3   :  { %16 = vsyncpa [#allocation14], 0 }
   0x4   :  { %17 = vsyncpa [#allocation17], 0  ;;  %s538_s21 = smov [#allocation7]  }
   0x5   :  { %s23_s22 = sshll.u32 %s538_s21, 4  ;;  %s24_s22 = int_to_ptr.vmem [resolvable:$true] %s23_s22 }
   0x6   :  { %s416_s23 = scalar_lea.vmem %s24_s22, 128  ;;  %p421_p1 = scmp.lt.s32.totalorder %s24_s22, %s24_s22 }
   0x7   :  { %p417_p0 = scmp.ne.s32.totalorder %s24_s22, %s416_s23  ;;  %p422_p2 = scmp.lt.s32.totalorder %s416_s23, %s416_s23 }
   0x9   :  { %p423_p3 = por %p422_p2, %p421_p1 }
   0xb   :  { %p424_p4 = pnand %p423_p3, %p417_p0 }
   0xd   :  { %427 = shalt.err (!%p424_p4)
}
   0xe   :  { %s539_s24 = smov 64   ;;  %s540_s25 = smov 4  }
   0xf   :  { %29 = dma.hbm_to_vmem [thread:$0]  %s649_s1, 128, %s24_s22, [#allocation8], %s539_s24, %s539_s24, %s540_s25  }
  0x10   :  { %s541_s28 = smov [#allocation10]  }
  0x11   :  { %s35_s29 = sshll.u32 %s541_s28, 4  ;;  %s36_s29 = int_to_ptr.vmem [resolvable:$true] %s35_s29 }
  0x12   :  { %s436_s30 = scalar_lea.vmem %s36_s29, 128  ;;  %p441_p6 = scmp.lt.s32.totalorder %s36_s29, %s36_s29 }
  0x13   :  { %p437_p5 = scmp.ne.s32.totalorder %s36_s29, %s436_s30  ;;  %p442_p7 = scmp.lt.s32.totalorder %s436_s30, %s436_s30 }
  0x15   :  { %p443_p8 = por %p442_p7, %p441_p6 }
  0x17   :  { %p444_p9 = pnand %p443_p8, %p437_p5 }
  0x19   :  { %447 = shalt.err (!%p444_p9)
}
  0x1a   :  { %41 = dma.hbm_to_vmem [thread:$0]  %s650_s2, 128, %s36_s29, [#allocation11], %s539_s24, %s539_s24, %s540_s25  }
  0x1b   :  { %528 = dma.done.wait [#allocation8], 128  }
  0x1c   :  { %529 = vsyncadd [#allocation8], 4294967168 }
  0x1d   :  { %530 = dma.done.wait [#allocation11], 128  }
  0x1e   :  { %531 = vsyncadd [#allocation11], 4294967168  ;;  %vm54_vm0 = vcmask 7168   ;;  %vm59_vm1 = vcmask 0   ;;  %v542_v0 = vmov 0.0   ;;  %vm543_vm2 = vmmov 0  }
  0x1f   :  { %57 = vst.msk [vmem:[#allocation3] sm:$0xff] %vm54_vm0, %v542_v0  ;;  %58 = vst.msk [vmem:[#allocation3 + $0x8] sm:$0xff] %vm54_vm0, %v542_v0  ;;  %366 = vmatprep.subr.bf16.mxu0 %v542_v0  ;;  %368 = vmatprep.mubr.msk.bf16.mxu0 %vm543_vm2, %v542_v0  ;;  %vm75_vm3 = vcmask 261120   ;;  %v387_v1 = vld [vmem:[#allocation10] sm:$0xff]   ;;  %v61_v3 = vld [vmem:[#allocation7] sm:$0xff]   ;;  %vm151_vm4 = vcmask 130048   ;;  %v136_v7 = vlaneseq  ;;  %v123_v9 = vstv %s648_s0 }
  0x20   :  { %60 = vst.msk [vmem:[#allocation4] sm:$0x1] %vm59_vm1, %v542_v0  ;;  %v80_v2 = vsel %vm75_vm3, %v387_v1, 0  ;;  %v544_v4 = vmov -inf   ;;  %v545_v6 = vmov -1e+30   ;;  %v234_v22 = vunpack.c.l.bf16 %v61_v3 }
  0x21   :  { %367 = vmatpush3.bf16.xpose.msra.mxu0 %v80_v2  ;;  %v155_v5 = vsel %vm151_vm4, -1e+30, %v544_v4  ;;  %56 = vst.msk [vmem:[#allocation2 + $0x8] sm:$0xff] %vm54_vm0, %v545_v6  ;;  %55 = vst.msk [vmem:[#allocation2] sm:$0xff] %vm54_vm0, %v545_v6  ;;  %v137_v8 = vand.u32 127, %v136_v7  ;;  %v546_v59 = vmov 0  }
  0x22   :  { %156 = vmax.xlane.f32.xlu1 %v155_v5  ;;  %v361_v21 = vld [vmem:[#allocation10] sm:$0xf]   ;;  %386 = vset.pattern.permute.xlu0 %v546_v59  ;;  %s547_s0 = smov [#allocation13]   ;;  %s548_s10 = smov [#allocation12]  }
  0x23   :  { %vm140_vm5 = vcmp.lt.s32.totalorder %v137_v8, 8  ;;  %v362_v23 = vunpack.c.l.bf16 %v361_v21  ;;  %385 = vset.pattern.permute.xlu1 %v546_v59  ;;  %s313_s9 = sshll.u32 %s547_s0, 4  ;;  %s303_s11 = sshll.u32 %s548_s10, 4  ;;  %s314_s9 = int_to_ptr.vmem [resolvable:$true] %s313_s9  ;;  %s304_s11 = int_to_ptr.vmem [resolvable:$true] %s303_s11 }
  0x24   :  { %s448_s12 = scalar_lea.vmem %s314_s9, 128  ;;  %p453_p11 = scmp.lt.s32.totalorder %s314_s9, %s314_s9 }
  0x25   :  { %v238_v24 = vmul.f32 %v362_v23, %v234_v22  ;;  %p449_p10 = scmp.ne.s32.totalorder %s314_s9, %s448_s12  ;;  %p454_p12 = scmp.lt.s32.totalorder %s448_s12, %s448_s12 }
  0x26   :  { %v175_v23 = vld [vmem:[#allocation3 + $0x8] sm:$0xff] }
  0x27   :  { %v240_v25 = vsel %vm75_vm3, %v238_v24, 0.0  ;;  %p455_p13 = por %p454_p12, %p453_p11 }
  0x28   :  { %369 = vmatmul.mubr.msk.bf16.vlgmr.msra.gmra.mxu0 %vm75_vm3, %v61_v3  ;;  %v604_v17 = vld [vmem:[#allocation2 + $0x8] sm:$0xff]  ;;  %241 = vadd.xlane.f32.xlu1 %v240_v25  ;;  %v170_v26 = vld [vmem:[#allocation2] sm:$0xff] }
  0x29   :  { %p456_p0 = pnand %p455_p13, %p449_p10 }
  0xab   :  { %v606_v18 = vpop.xlane.xlu1 %156 }
  0xac   :  { %v610_v19 = vmax.f32 %v604_v17, %v606_v18  ;;  %v159_v27 = vsub.f32 -1e+30, %v606_v18 }
  0xae   :  { %v177_v20 = vsub.f32 %v604_v17, %v610_v19  ;;  %198 = vst.msk [vmem:[#allocation2 + $0x8] sm:$0xff] %vm54_vm0, %v610_v19  ;;  %v162_v32 = vmul.f32 1.442695, %v159_v27 }
  0xb1   :  { %v242_v53 = vpop.xlane.xlu1 %241 }
  0xb2   :  { %v246_v55 = vmul.f32 %v242_v53, %v123_v9 }
  0xb4   :  { %v251_v58 = vrot.slane %v246_v55, 4 }
  0xb6   :  { %v252_v61 = vadd.f32 %v251_v58, %v246_v55 }
  0xb8   :  { %v253_v63 = vrot.slane %v252_v61, 2 }
  0xba   :  { %v254_v1 = vadd.f32 %v253_v63, %v252_v61 }
  0xbc   :  { %v255_v3 = vrot.slane %v254_v1, 1 }
  0xbe   :  { %v256_v5 = vadd.f32 %v255_v3, %v254_v1 }
  0xc0   :  { %258 = vst.msk [vmem:[#allocation4] sm:$0x1] %vm59_vm1, %v256_v5 }
  0xc7   :  { %v359_v7 = vld [vmem:[#allocation4] ss:$0 sm:$0xff] }
  0xe8   :  { %v116_v10 = vpop.f32.mrf.mxu0 }
  0xe9   :  { %v124_v11 = vmul.f32 %v123_v9, %v116_v10  ;;  %v185_v9 = vsub.f32 %v606_v18, %v610_v19 }
  0xea   :  { %v370_v12 = vpop.f32.mrf.mxu0 }
  0xeb   :  { %v149_v13 = vsel %vm140_vm5, %v124_v11, -1e+30  ;;  %v180_v11 = vmul.f32 1.442695, %v177_v20 }
  0xec   :  { %v119_v14 = vpop.f32.mrf.mxu0  ;;  %v152_v15 = vsel %vm151_vm4, %v149_v13, -inf }
  0xed   :  { %153 = vmax.xlane.f32.xlu0 %v152_v15  ;;  %v174_v15 = vld [vmem:[#allocation3] sm:$0xff] }
  0xee   :  { %v371_v16 = vpop.f32.mrf.mxu0 }
 0x176   :  { %v154_v28 = vpop.xlane.xlu0 %153 }
 0x177   :  { %v158_v29 = vsub.f32 %v149_v13, %v154_v28  ;;  %v172_v30 = vmax.f32 %v170_v26, %v154_v28  ;;  %v199_v31 = vmax.f32 %v154_v28, %v606_v18  ;;  %v188_v13 = vmul.f32 1.442695, %v185_v9 }
 0x179   :  { %v160_v33 = vmul.f32 1.442695, %v158_v29  ;;  %v176_v34 = vsub.f32 %v170_v26, %v172_v30  ;;  %197 = vst.msk [vmem:[#allocation2] sm:$0xff] %vm54_vm0, %v172_v30  ;;  %v200_v35 = vrot.slane %v199_v31, 4  ;;  %v184_v8 = vsub.f32 %v154_v28, %v172_v30 }
 0x17b   :  { %390 = vpow2.f32 %v160_v33  ;;  %v201_v36 = vmax.f32 %v199_v31, %v200_v35  ;;  %v178_v10 = vmul.f32 1.442695, %v176_v34  ;;  %v186_v12 = vmul.f32 1.442695, %v184_v8 }
 0x17c   :  { %392 = vpow2.f32 %v162_v32 }
 0x17d   :  { %v202_v37 = vrot.slane %v201_v36, 2 }
 0x17f   :  { %v203_v38 = vmax.f32 %v201_v36, %v202_v37 }
 0x180   :  { %v259_v32 = vld [vmem:[#allocation2] sm:$0xff] }
 0x181   :  { %v204_v39 = vrot.slane %v203_v38, 1 }
 0x183   :  { %v205_v40 = vmax.f32 %v203_v38, %v204_v39 }
 0x185   :  { %v206_v41 = vsub.f32 %v154_v28, %v205_v40  ;;  %v207_v42 = vsub.f32 %v606_v18, %v205_v40  ;;  %223 = vst.msk [vmem:[#allocation12] sm:$0xff] %vm151_vm4, %v205_v40 }
 0x187   :  { %v208_v43 = vmul.f32 1.442695, %v206_v41  ;;  %v210_v44 = vmul.f32 1.442695, %v207_v42 }
 0x188   :  { %v391_v45 = vpop.eup %390 }
 0x189   :  { %394 = vpow2.f32 %v208_v43  ;;  %v164_v46 = vsel %vm151_vm4, %v391_v45, 0.0  ;;  %v393_v47 = vpop.eup %392 }
 0x18a   :  { %396 = vpow2.f32 %v210_v44  ;;  %165 = vadd.xlane.f32.xlu0 %v164_v46  ;;  %v167_v48 = vsel %vm151_vm4, %v393_v47, 0.0 }
 0x18b   :  { %398 = vpow2.f32 %v178_v10 }
 0x18c   :  { %400 = vpow2.f32 %v180_v11 }
 0x18d   :  { %402 = vpow2.f32 %v186_v12 }
 0x18e   :  { %168 = vadd.xlane.f32.xlu0 %v167_v48  ;;  %404 = vpow2.f32 %v188_v13 }
 0x196   :  { %v395_v49 = vpop.eup %394 }
 0x197   :  { %v397_v50 = vpop.eup %396  ;;  %v212_v51 = vmul.f32 %v395_v49, %v391_v45 }
 0x198   :  { %v213_v52 = vmul.f32 %v397_v50, %v393_v47  ;;  %v399_v14 = vpop.eup %398 }
 0x199   :  { %v214_v54 = vsel %vm151_vm4, %v212_v51, 0.0  ;;  %v401_v16 = vpop.eup %400  ;;  %v182_v24 = vmul.f32 %v399_v14, %v174_v15 }
 0x19a   :  { %v215_v56 = vsel %vm151_vm4, %v213_v52, 0.0  ;;  %v403_v21 = vpop.eup %402  ;;  %v183_v27 = vmul.f32 %v401_v16, %v175_v23 }
 0x19b   :  { %v216_v57 = vadd.f32 %v215_v56, %v214_v54  ;;  %v405_v18 = vpop.eup %404 }
 0x19d   :  { %v217_v60 = vrot.slane %v216_v57, 4 }
 0x19f   :  { %v218_v62 = vadd.f32 %v217_v60, %v216_v57 }
 0x1a1   :  { %v219_v0 = vrot.slane %v218_v62, 2 }
 0x1a3   :  { %v220_v2 = vadd.f32 %v219_v0, %v218_v62 }
 0x1a4   :  { %293 = vperm.xlu0 %386, %v359_v7  }
 0x1a5   :  { %v221_v4 = vrot.slane %v220_v2, 1 }
 0x1a7   :  { %v222_v6 = vadd.f32 %v221_v4, %v220_v2 }
 0x1a9   :  { %224 = vst.msk [vmem:[#allocation13] sm:$0xff] %vm151_vm4, %v222_v6 }
 0x213   :  { %v166_v22 = vpop.xlane.xlu0 %165 }
 0x214   :  { %v190_v25 = vmul.f32 %v403_v21, %v166_v22 }
 0x216   :  { %v192_v26 = vadd.f32 %v190_v25, %v182_v24 }
 0x217   :  { %v169_v28 = vpop.xlane.xlu0 %168 }
 0x218   :  { %195 = vst.msk [vmem:[#allocation3] sm:$0xff] %vm54_vm0, %v192_v26  ;;  %v191_v17 = vmul.f32 %v405_v18, %v169_v28 }
 0x21a   :  { %v193_v19 = vadd.f32 %v191_v17, %v183_v27 }
 0x21c   :  { %196 = vst.msk [vmem:[#allocation3 + $0x8] sm:$0xff] %vm54_vm0, %v193_v19 }
 0x21f   :  { %v261_v20 = vld [vmem:[#allocation3] sm:$0xff]  ;;  %v294_v29 = vpop.permute.xlu0 %293 }
 0x220   :  { %406 = vlog2.f32 %v261_v20  ;;  %296 = vst [vmem:[#allocation16] sm:$0xff] %v294_v29 }
 0x22d   :  { %v407_v30 = vpop.eup %406 }
 0x22e   :  { %v264_v31 = vmul.f32 0.6931472, %v407_v30 }
 0x230   :  { %v267_v33 = vadd.f32 %v264_v31, %v259_v32 }
 0x232   :  { %v271_v34 = vsel %vm54_vm0, %v267_v33, 0.0 }
 0x233   :  { %v274_v35 = vrot.slane %v271_v34, 4 }
 0x235   :  { %v275_v36 = vadd.f32 %v274_v35, %v271_v34 }
 0x237   :  { %v276_v37 = vrot.slane %v275_v36, 2 }
 0x239   :  { %v277_v38 = vadd.f32 %v276_v37, %v275_v36 }
 0x23b   :  { %v278_v39 = vrot.slane %v277_v38, 1 }
 0x23c   :  { %459 = shalt.err (!%p456_p0)
}
 0x23d   :  { %316 = dma.vmem_to_hbm [thread:$0]  %s314_s9, 128, %s652_s4, [#allocation14]   ;;  %v279_v40 = vadd.f32 %v278_v39, %v277_v38 }
 0x23e   :  { %s468_s15 = scalar_lea.vmem %s304_s11, 128  ;;  %p473_p2 = scmp.lt.s32.totalorder %s304_s11, %s304_s11 }
 0x23f   :  { %p469_p1 = scmp.ne.s32.totalorder %s304_s11, %s468_s15  ;;  %p474_p3 = scmp.lt.s32.totalorder %s468_s15, %s468_s15 }
 0x241   :  { %p475_p4 = por %p474_p3, %p473_p2 }
 0x243   :  { %p476_p5 = pnand %p475_p4, %p469_p1 }
 0x245   :  { %479 = shalt.err (!%p476_p5)
}
 0x246   :  { %306 = dma.vmem_to_hbm [thread:$0]  %s304_s11, 128, %s651_s3, [#allocation9]   ;;  %282 = vperm.xlu1 %385, %v279_v40  }
 0x247   :  { %s549_s18 = smov [#allocation16]  }
 0x248   :  { %s333_s19 = sshll.u32 %s549_s18, 4  ;;  %s334_s19 = int_to_ptr.vmem [resolvable:$true] %s333_s19 }
 0x249   :  { %s488_s20 = scalar_lea.vmem %s334_s19, 128  ;;  %p493_p7 = scmp.lt.s32.totalorder %s334_s19, %s334_s19 }
 0x24a   :  { %p489_p6 = scmp.ne.s32.totalorder %s334_s19, %s488_s20  ;;  %p494_p8 = scmp.lt.s32.totalorder %s488_s20, %s488_s20 }
 0x24c   :  { %p495_p9 = por %p494_p8, %p493_p7 }
 0x24e   :  { %p496_p10 = pnand %p495_p9, %p489_p6 }
 0x250   :  { %499 = shalt.err (!%p496_p10)
}
 0x251   :  { %336 = dma.vmem_to_hbm [thread:$0]  %s334_s19, 128, %s654_s6, [#allocation17]  }
 0x252   :  { %s550_s22 = smov [#allocation15]  }
 0x253   :  { %s323_s23 = sshll.u32 %s550_s22, 4  ;;  %s324_s23 = int_to_ptr.vmem [resolvable:$true] %s323_s23 }
 0x254   :  { %s508_s3 = scalar_lea.vmem %s324_s23, 128  ;;  %p513_p12 = scmp.lt.s32.totalorder %s324_s23, %s324_s23 }
 0x255   :  { %p509_p11 = scmp.ne.s32.totalorder %s324_s23, %s508_s3  ;;  %p514_p13 = scmp.lt.s32.totalorder %s508_s3, %s508_s3 }
 0x257   :  { %p515_p0 = por %p514_p13, %p513_p12 }
 0x259   :  { %p516_p1 = pnand %p515_p0, %p509_p11 }
 0x2c1   :  { %v283_v41 = vpop.permute.xlu1 %282 }
 0x2c2   :  { %285 = vst [vmem:[#allocation15] sm:$0xff] %v283_v41 }
 0x2c3   :  { %519 = shalt.err (!%p516_p1)
}
 0x2c4   :  { %326 = dma.vmem_to_hbm [thread:$0]  %s324_s23, 128, %s653_s5, [#allocation14]  }
 0x2c5   :  { %532 = dma.done.wait [#allocation9], 128  }
 0x2c6   :  { %533 = vsyncadd [#allocation9], 4294967168 }
 0x2c7   :  { %534 = dma.done.wait [#allocation14], 256  }
 0x2c8   :  { %535 = vsyncadd [#allocation14], 4294967040 }
 0x2c9   :  { %536 = dma.done.wait [#allocation17], 128  }
 0x2ca   :  { %537 = vsyncadd [#allocation17], 4294967168 }
 0x2cb   :  { %349 = vsyncpa [#allocation8], 1 }
 0x2cc   :  { %350 = vsyncpa [#allocation11], 1 }
 0x2cd   :  { %351 = vsyncpa [#allocation9], 1 }
 0x2ce   :  { %352 = vsyncpa [#allocation14], 1 }
 0x2cf   :  { %353 = vsyncpa [#allocation17], 1 }

</bundles_post_ra>
